<compile_context>
chip_gen: v7x
topology: tpu7x:2x2x1
jax: 0.10.0
libtpu: 0.0.40
codegen_flags: <defaults>
</compile_context>

<pallas_src>
import functools

import jax
import jax.numpy as jnp
from jax.experimental import pallas as pl
from jax.experimental.pallas import tpu as pltpu

LANE = 128
MAX_TILE_B = 4096   # batch rows per grid step; VMEM-safe on v5e / v6e / v7x
SPLIT_B = 512       # above this, force >= 2 grid steps so both v7x TCs get work


def _round_up(x, m):
    return (x + m - 1) // m * m


def _choose_tile_b(b, max_tile_b, split_threshold):
    """Balanced batch tile: multiple of 8, <= max_tile_b, >=2 tiles if b is large."""
    b8 = _round_up(b, 8)
    if b8 <= split_threshold:
        n_tiles = pl.cdiv(b8, max_tile_b)
    else:
        n_tiles = max(2, pl.cdiv(b8, max_tile_b))
    tile_b = _round_up(pl.cdiv(b8, n_tiles), 8)
    return min(tile_b, max_tile_b)


# --------------------------------------------------------------------------- #
# Kernel
# --------------------------------------------------------------------------- #
def decoder_struct_kernel(z_ref, w1_ref, ws_ref, b_ref, out_ref, *, p):
    """One batch tile: 4 x (Linear + ReLU) + final Linear, fully in VMEM.

    z_ref  : [TILE_B, d0]      f32
    w1_ref : [d0, P]           bf16 (output zero-padded to P)
    ws_ref : [4, P, P]         bf16 (layers 2..5, zero-padded)
    b_ref  : [1, 5*P]          f32  (all biases, zero-padded, concatenated)
    out_ref: [TILE_B, P]       f32 or bf16
    """
    # Layer 1: unpadded input width, padded output width.
    h = jnp.dot(z_ref[...].astype(jnp.bfloat16), w1_ref[...],
                preferred_element_type=jnp.float32)
    # Bias-add / ReLU in f32 on the VPU, then carry the activation in bf16
    # (the bf16 cast would happen at the next MXU dot anyway).
    h = jnp.maximum(h + b_ref[:, 0:p], 0.0).astype(jnp.bfloat16)

    # Layers 2..4: [P, P] weights + ReLU.
    for i in range(3):
        h = jnp.dot(h, ws_ref[i], preferred_element_type=jnp.float32)
        h = jnp.maximum(h + b_ref[:, (i + 1) * p:(i + 2) * p],
                        0.0).astype(jnp.bfloat16)

    # Layer 5: [P, P] weight, no ReLU.
    h = jnp.dot(h, ws_ref[3], preferred_element_type=jnp.float32)
    out_ref[...] = (h + b_ref[:, 4 * p:5 * p]).astype(out_ref.dtype)


# --------------------------------------------------------------------------- #
# One-time parameter packing (hoisted out of the forward path)
# --------------------------------------------------------------------------- #
def pack_params(params, latent_dims, embed_size):
    """Pad all layer widths to a common lane-aligned width P, pack operands.

    params: list of 5 (W [in, out] f32, b [out] f32) pairs (W already transposed
    from PyTorch's [out, in] layout).
    Returns (w1 bf16 [d0, P], wstack bf16 [4, P, P], bias f32 [1, 5*P], P, embed_size).

    NOTE: the zero-padding scheme is only valid for activations with f(0) == 0
    (ReLU here); padded lanes stay exactly zero through every layer.
    NOTE: weights are stored in bf16 (half the DMA bytes, native MXU rate);
    users needing exact f32 parity with the PyTorch module should be aware of
    the ~bf16-rounding deviation.
    """
    assert embed_size == 4 * latent_dims, (
        "Decoder_Struct requires embed_size == 4 * latent_dims "
        "(linear3 output must equal linear4 input)")
    p = _round_up(embed_size, LANE)

    def pad_w(w, rows, cols):
        return jnp.pad(w, ((0, rows - w.shape[0]), (0, cols - w.shape[1])))

    def pad_b(b, cols):
        return jnp.pad(b, (0, cols - b.shape[0]))

    w1, _ = params[0]
    d0 = w1.shape[0]
    w1p = pad_w(w1, d0, p).astype(jnp.bfloat16)
    wstack = jnp.stack([pad_w(w, p, p) for (w, _) in params[1:]]).astype(jnp.bfloat16)
    bias = jnp.concatenate([pad_b(b, p) for (_, b) in params])[None, :].astype(jnp.float32)
    return (w1p, wstack, bias, p, embed_size)


# --------------------------------------------------------------------------- #
# Jitted Pallas forward (per-call work only: pad batch -> pallas_call -> slice)
# --------------------------------------------------------------------------- #
@functools.partial(
    jax.jit,
    static_argnames=("p", "embed_size", "out_dtype", "max_tile_b", "split_threshold"))
def _decoder_struct_pallas(z, w1, wstack, bias, *, p, embed_size, out_dtype,
                           max_tile_b, split_threshold):
    b, d0 = z.shape
    tile_b = _choose_tile_b(b, max_tile_b, split_threshold)
    padded_b = pl.cdiv(b, tile_b) * tile_b
    if padded_b != b:
        z = jnp.pad(z, ((0, padded_b - b), (0, 0)))
    grid = (padded_b // tile_b,)

    in_specs = [
        pl.BlockSpec((tile_b, d0), lambda i: (i, 0)),        # z: batch-tiled
        pl.BlockSpec(w1.shape, lambda i: (0, 0)),            # W1: resident
        pl.BlockSpec(wstack.shape, lambda i: (0, 0, 0)),     # W2..W5: resident
        pl.BlockSpec(bias.shape, lambda i: (0, 0)),          # biases: resident
    ]
    out_spec = pl.BlockSpec((tile_b, p), lambda i: (i, 0))   # lane-dense output

    out_itemsize = jnp.dtype(out_dtype).itemsize
    flops = 2 * padded_b * (d0 * p + 4 * p * p)
    bytes_accessed = (padded_b * d0 * 4 + padded_b * p * out_itemsize
                      + w1.size * 2 + wstack.size * 2 + bias.size * 4)
    cost = pl.CostEstimate(flops=flops, transcendentals=0,
                           bytes_accessed=bytes_accessed)

    out = pl.pallas_call(
        functools.partial(decoder_struct_kernel, p=p),
        out_shape=jax.ShapeDtypeStruct((padded_b, p), out_dtype),
        grid=grid,
        in_specs=in_specs,
        out_specs=out_spec,
        compiler_params=pltpu.CompilerParams(
            dimension_semantics=("parallel",)),
        cost_estimate=cost,
    )(z, w1, wstack, bias)

    return out[:b, :embed_size]


@functools.partial(jax.jit, static_argnames=("p", "embed_size", "out_dtype"))
def _decoder_struct_xla(z, w1, wstack, bias, *, p, embed_size, out_dtype):
    """Small-batch fallback: same math, plain XLA ops (no Pallas launch cost)."""
    h = jnp.dot(z.astype(jnp.bfloat16), w1, preferred_element_type=jnp.float32)
    h = jnp.maximum(h + bias[:, 0:p], 0.0).astype(jnp.bfloat16)
    for i in range(3):
        h = jnp.dot(h, wstack[i], preferred_element_type=jnp.float32)
        h = jnp.maximum(h + bias[:, (i + 1) * p:(i + 2) * p], 0.0).astype(jnp.bfloat16)
    h = jnp.dot(h, wstack[3], preferred_element_type=jnp.float32) + bias[:, 4 * p:5 * p]
    return h[:, :embed_size].astype(out_dtype)


def decoder_struct_forward(z, packed, *, out_dtype=jnp.float32,
                           max_tile_b=MAX_TILE_B, split_threshold=SPLIT_B,
                           min_pallas_batch=0):
    """Fused forward pass of Decoder_Struct.

    z: [B, latent_dims // 4] f32.  `packed` comes from pack_params (one-time).
    Set out_dtype=jnp.bfloat16 if the consumer accepts it (halves the dominant
    HBM output stream).  Set min_pallas_batch>0 to route tiny batches through
    the plain-XLA fallback.
    """
    w1, wstack, bias, p, embed_size = packed
    if z.shape[0] < min_pallas_batch:
        return _decoder_struct_xla(z, w1, wstack, bias, p=p,
                                   embed_size=embed_size, out_dtype=out_dtype)
    return _decoder_struct_pallas(z, w1, wstack, bias, p=p, embed_size=embed_size,
                                  out_dtype=out_dtype, max_tile_b=max_tile_b,
                                  split_threshold=split_threshold)


# --------------------------------------------------------------------------- #
# Init + references
# --------------------------------------------------------------------------- #
def init_linear(key, in_f, out_f):
    """Deterministic init mimicking PyTorch nn.Linear default (uniform +/- 1/sqrt(in))."""
    kw, kb = jax.random.split(key)
    bound = 1.0 / jnp.sqrt(jnp.float32(in_f))
    w = jax.random.uniform(kw, (in_f, out_f), jnp.float32, -bound, bound)
    b = jax.random.uniform(kb, (out_f,), jnp.float32, -bound, bound)
    return w, b


def reference_forward_f32(z, params):
    """Exact f32 reference matching the PyTorch module."""
    h = z
    for i, (w, b) in enumerate(params):
        h = h @ w + b
        if i < len(params) - 1:
            h = jnp.maximum(h, 0.0)
    return h


def reference_forward_bf16(z, params):
    """Reference matching the kernel's precision policy (bf16 MXU inputs, f32 accum/bias)."""
    h = z
    for i, (w, b) in enumerate(params):
        h = jnp.dot(h.astype(jnp.bfloat16), w.astype(jnp.bfloat16),
                    preferred_element_type=jnp.float32) + b
        if i < len(params) - 1:
            h = jnp.maximum(h, 0.0)
    return h


if __name__ == "__main__":
    latent_dims = 32
    embed_size = 4 * latent_dims  # = 128; required so linear3 out == linear4 in
    batch = 8

    layer_dims = [
        (latent_dims // 4, latent_dims // 2),   # linear1: 8   -> 16
        (latent_dims // 2, latent_dims),        # linear2: 16  -> 32
        (latent_dims, latent_dims * 2),         # linear3: 32  -> 64
        (embed_size // 2, embed_size),          # linear4: 64  -> 128
        (embed_size, embed_size),               # linear5: 128 -> 128
    ]

    root = jax.random.PRNGKey(0)
    keys = jax.random.split(root, len(layer_dims) + 1)
    params = [init_linear(keys[i], inp, out)
              for i, (inp, out) in enumerate(layer_dims)]

    # One-time packing (hoisted out of the forward path).
    packed = pack_params(params, latent_dims, embed_size)

    # --- single-tile path ---
    z = jax.random.normal(keys[-1], (batch, latent_dims // 4), jnp.float32)
    out = jax.block_until_ready(decoder_struct_forward(z, packed))

    ref_bf16 = reference_forward_bf16(z, params)   # same precision policy as kernel
    ref_f32 = reference_forward_f32(z, params)     # exact module semantics

    assert out.shape == (batch, embed_size)
    assert out.dtype == jnp.float32
    assert jnp.allclose(out, ref_bf16, atol=1e-4, rtol=1e-4)
    assert jnp.allclose(out, ref_f32, atol=1e-1, rtol=1e-1)  # bf16 weight rounding

    # --- multi-tile grid path (tiny tile cap just to exercise rebalanced
    #     tiling, batch padding and the 2+-step "parallel" grid) ---
    z2 = jax.random.normal(jax.random.PRNGKey(1), (20, latent_dims // 4), jnp.float32)
    out2 = jax.block_until_ready(
        decoder_struct_forward(z2, packed, max_tile_b=8, split_threshold=0))
    ref2 = reference_forward_bf16(z2, params)
    assert out2.shape == (20, embed_size)
    assert jnp.allclose(out2, ref2, atol=1e-4, rtol=1e-4)

    print("KERNEL_OK")
</pallas_src>

<mosaic_0001>
module attributes {stable_mosaic.version = 11 : i64} {
  func.func @decoder_struct_kernel(%arg0: i32, %arg1: memref<8x8xf32, #tpu.memory_space<vmem>>, %arg2: memref<8x128xbf16, #tpu.memory_space<vmem>>, %arg3: memref<4x128x128xbf16, #tpu.memory_space<vmem>>, %arg4: memref<1x640xf32, #tpu.memory_space<vmem>>, %arg5: memref<8x128xf32, #tpu.memory_space<vmem>>) attributes {dimension_semantics = [#tpu.dimension_semantics<parallel>], iteration_bounds = array<i64: 1>, scalar_prefetch = 0 : i64, scratch_operands = 0 : i64, tpu.core_type = #tpu.core_type<tc>, window_params = [{transform_indices = @transform_0, window_bounds = array<i64: 8, 8>}, {pipeline_mode = #tpu.pipeline_mode<synchronous>, transform_indices = @transform_1, window_bounds = array<i64: 8, 128>}, {pipeline_mode = #tpu.pipeline_mode<synchronous>, transform_indices = @transform_2, window_bounds = array<i64: 4, 128, 128>}, {pipeline_mode = #tpu.pipeline_mode<synchronous>, transform_indices = @transform_3, window_bounds = array<i64: 1, 640>}, {transform_indices = @transform_4, window_bounds = array<i64: 8, 128>}]} {
    %c0 = arith.constant 0 : index
    %c0_0 = arith.constant 0 : index
    %0 = vector.load %arg1[%c0, %c0_0] : memref<8x8xf32, #tpu.memory_space<vmem>>, vector<8x8xf32>
    %1 = arith.truncf %0 : vector<8x8xf32> to vector<8x8xbf16>
    %c0_1 = arith.constant 0 : index
    %c0_2 = arith.constant 0 : index
    %2 = vector.load %arg2[%c0_1, %c0_2] : memref<8x128xbf16, #tpu.memory_space<vmem>>, vector<8x128xbf16>
    %cst = arith.constant dense<0.000000e+00> : vector<8x128xf32>
    %3 = tpu.matmul %1, %2, %cst {dimension_numbers = #tpu.dot_dimension_numbers<[1], [0], [0], [1], [0, 0, 1, 1], [], []>} : vector<8x8xbf16>, vector<8x128xbf16>, vector<8x128xf32> -> vector<8x128xf32>
    %c0_3 = arith.constant 0 : index
    %c0_4 = arith.constant 0 : index
    %4 = vector.load %arg4[%c0_3, %c0_4] : memref<1x640xf32, #tpu.memory_space<vmem>>, vector<1x128xf32>
    %5 = vector.broadcast %4 : vector<1x128xf32> to vector<8x128xf32>
    %6 = arith.addf %3, %5 : vector<8x128xf32>
    %cst_5 = arith.constant 0.000000e+00 : f32
    %7 = vector.broadcast %cst_5 : f32 to vector<8x128xf32>
    %8 = arith.maximumf %6, %7 : vector<8x128xf32>
    %9 = arith.truncf %8 : vector<8x128xf32> to vector<8x128xbf16>
    %c0_6 = arith.constant 0 : index
    %c0_7 = arith.constant 0 : index
    %c0_8 = arith.constant 0 : index
    %10 = vector.load %arg3[%c0_6, %c0_7, %c0_8] : memref<4x128x128xbf16, #tpu.memory_space<vmem>>, vector<1x128x128xbf16>
    %11 = vector.shape_cast %10 : vector<1x128x128xbf16> to vector<128x128xbf16>
    %cst_9 = arith.constant dense<0.000000e+00> : vector<8x128xf32>
    %12 = tpu.matmul %9, %11, %cst_9 {dimension_numbers = #tpu.dot_dimension_numbers<[1], [0], [0], [1], [0, 0, 1, 1], [], []>} : vector<8x128xbf16>, vector<128x128xbf16>, vector<8x128xf32> -> vector<8x128xf32>
    %c0_10 = arith.constant 0 : index
    %c128 = arith.constant 128 : index
    %13 = vector.load %arg4[%c0_10, %c128] : memref<1x640xf32, #tpu.memory_space<vmem>>, vector<1x128xf32>
    %14 = vector.broadcast %13 : vector<1x128xf32> to vector<8x128xf32>
    %15 = arith.addf %12, %14 : vector<8x128xf32>
    %cst_11 = arith.constant 0.000000e+00 : f32
    %16 = vector.broadcast %cst_11 : f32 to vector<8x128xf32>
    %17 = arith.maximumf %15, %16 : vector<8x128xf32>
    %18 = arith.truncf %17 : vector<8x128xf32> to vector<8x128xbf16>
    %c1 = arith.constant 1 : index
    %c0_12 = arith.constant 0 : index
    %c0_13 = arith.constant 0 : index
    %19 = vector.load %arg3[%c1, %c0_12, %c0_13] : memref<4x128x128xbf16, #tpu.memory_space<vmem>>, vector<1x128x128xbf16>
    %20 = vector.shape_cast %19 : vector<1x128x128xbf16> to vector<128x128xbf16>
    %cst_14 = arith.constant dense<0.000000e+00> : vector<8x128xf32>
    %21 = tpu.matmul %18, %20, %cst_14 {dimension_numbers = #tpu.dot_dimension_numbers<[1], [0], [0], [1], [0, 0, 1, 1], [], []>} : vector<8x128xbf16>, vector<128x128xbf16>, vector<8x128xf32> -> vector<8x128xf32>
    %c0_15 = arith.constant 0 : index
    %c256 = arith.constant 256 : index
    %22 = vector.load %arg4[%c0_15, %c256] : memref<1x640xf32, #tpu.memory_space<vmem>>, vector<1x128xf32>
    %23 = vector.broadcast %22 : vector<1x128xf32> to vector<8x128xf32>
    %24 = arith.addf %21, %23 : vector<8x128xf32>
    %cst_16 = arith.constant 0.000000e+00 : f32
    %25 = vector.broadcast %cst_16 : f32 to vector<8x128xf32>
    %26 = arith.maximumf %24, %25 : vector<8x128xf32>
    %27 = arith.truncf %26 : vector<8x128xf32> to vector<8x128xbf16>
    %c2 = arith.constant 2 : index
    %c0_17 = arith.constant 0 : index
    %c0_18 = arith.constant 0 : index
    %28 = vector.load %arg3[%c2, %c0_17, %c0_18] : memref<4x128x128xbf16, #tpu.memory_space<vmem>>, vector<1x128x128xbf16>
    %29 = vector.shape_cast %28 : vector<1x128x128xbf16> to vector<128x128xbf16>
    %cst_19 = arith.constant dense<0.000000e+00> : vector<8x128xf32>
    %30 = tpu.matmul %27, %29, %cst_19 {dimension_numbers = #tpu.dot_dimension_numbers<[1], [0], [0], [1], [0, 0, 1, 1], [], []>} : vector<8x128xbf16>, vector<128x128xbf16>, vector<8x128xf32> -> vector<8x128xf32>
    %c0_20 = arith.constant 0 : index
    %c384 = arith.constant 384 : index
    %31 = vector.load %arg4[%c0_20, %c384] : memref<1x640xf32, #tpu.memory_space<vmem>>, vector<1x128xf32>
    %32 = vector.broadcast %31 : vector<1x128xf32> to vector<8x128xf32>
    %33 = arith.addf %30, %32 : vector<8x128xf32>
    %cst_21 = arith.constant 0.000000e+00 : f32
    %34 = vector.broadcast %cst_21 : f32 to vector<8x128xf32>
    %35 = arith.maximumf %33, %34 : vector<8x128xf32>
    %36 = arith.truncf %35 : vector<8x128xf32> to vector<8x128xbf16>
    %c3 = arith.constant 3 : index
    %c0_22 = arith.constant 0 : index
    %c0_23 = arith.constant 0 : index
    %37 = vector.load %arg3[%c3, %c0_22, %c0_23] : memref<4x128x128xbf16, #tpu.memory_space<vmem>>, vector<1x128x128xbf16>
    %38 = vector.shape_cast %37 : vector<1x128x128xbf16> to vector<128x128xbf16>
    %cst_24 = arith.constant dense<0.000000e+00> : vector<8x128xf32>
    %39 = tpu.matmul %36, %38, %cst_24 {dimension_numbers = #tpu.dot_dimension_numbers<[1], [0], [0], [1], [0, 0, 1, 1], [], []>} : vector<8x128xbf16>, vector<128x128xbf16>, vector<8x128xf32> -> vector<8x128xf32>
    %c0_25 = arith.constant 0 : index
    %c512 = arith.constant 512 : index
    %40 = vector.load %arg4[%c0_25, %c512] : memref<1x640xf32, #tpu.memory_space<vmem>>, vector<1x128xf32>
    %41 = vector.broadcast %40 : vector<1x128xf32> to vector<8x128xf32>
    %42 = arith.addf %39, %41 : vector<8x128xf32>
    %c0_26 = arith.constant 0 : index
    %c0_27 = arith.constant 0 : index
    %43 = vector.load %arg5[%c0_26, %c0_27] : memref<8x128xf32, #tpu.memory_space<vmem>>, vector<8x128xf32>
    tpu.vector_store %arg5[%c0_26, %c0_27], %42 {strides = array<i32>} : memref<8x128xf32, #tpu.memory_space<vmem>>, vector<8x128xf32>,
    return
  }
  func.func @transform_0(%arg0: i32) -> (i32, i32) {
    %c0_i32 = arith.constant 0 : i32
    %c0_i32_0 = arith.constant 0 : i32
    return %arg0, %c0_i32 : i32, i32
  }
  func.func @transform_1(%arg0: i32) -> (i32, i32) {
    %c0_i32 = arith.constant 0 : i32
    %c0_i32_0 = arith.constant 0 : i32
    %c0_i32_1 = arith.constant 0 : i32
    return %c0_i32, %c0_i32_0 : i32, i32
  }
  func.func @transform_2(%arg0: i32) -> (i32, i32, i32) {
    %c0_i32 = arith.constant 0 : i32
    %c0_i32_0 = arith.constant 0 : i32
    %c0_i32_1 = arith.constant 0 : i32
    %c0_i32_2 = arith.constant 0 : i32
    return %c0_i32, %c0_i32_0, %c0_i32_1 : i32, i32, i32
  }
  func.func @transform_3(%arg0: i32) -> (i32, i32) {
    %c0_i32 = arith.constant 0 : i32
    %c0_i32_0 = arith.constant 0 : i32
    %c0_i32_1 = arith.constant 0 : i32
    return %c0_i32, %c0_i32_0 : i32, i32
  }
  func.func @transform_4(%arg0: i32) -> (i32, i32) {
    %c0_i32 = arith.constant 0 : i32
    %c0_i32_0 = arith.constant 0 : i32
    return %arg0, %c0_i32 : i32, i32
  }
}

</mosaic_0001>

<bundles_post_ra>
// kernel: _decoder_struct_pallas.1
= control target key start
LH: loop header
LB: loop body
LE: loop exit
PB: predicated region body
PF: predicated region fallthrough
CT: control target
= control target key end

     0   :  { %9 = vsyncpa [#allocation3], 0  ;;  %s1021_s0 = inlined_call_operand.hbm [shape: f32[8,8], index: 0, kind: input, shape index: {}]   ;;  %s1022_s1 = inlined_call_operand.hbm [shape: bf16[8,128], index: 1, kind: input, shape index: {}]   ;;  %s1023_s2 = inlined_call_operand.hbm [shape: bf16[4,128,128], index: 2, kind: input, shape index: {}]   ;;  %s1024_s3 = inlined_call_operand.vmem [shape: f32[1,640], index: 3, kind: input, shape index: {}]   ;;  %s1025_s4 = inlined_call_operand.hbm [shape: f32[8,128], index: 4, kind: output, shape index: {}]  }
   0x1   :  { %10 = vsyncpa [#allocation6], 0 }
   0x2   :  { %11 = vsyncpa [#allocation4], 0  ;;  %s882_s15 = smov [#allocation5]   ;;  %s883_s17 = smov [#allocation2]  }
   0x3   :  { %s28_s16 = sshll.u32 %s882_s15, 4  ;;  %s18_s18 = sshll.u32 %s883_s17, 4  ;;  %s29_s16 = int_to_ptr.vmem [resolvable:$true] %s28_s16  ;;  %s19_s18 = int_to_ptr.vmem [resolvable:$true] %s18_s18 }
   0x4   :  { %s788_s21 = scalar_lea.hbm %s1022_s1, 64 }
   0x5   :  { %p789_p0 = scmp.ne.s32.totalorder %s1022_s1, %s788_s21  ;;  %p792_p1 = scmp.lt.u32.totalorder %s788_s21, %s1022_s1 }
   0x7   :  { %p794_p2 = pnand %p792_p1, %p789_p0 }
   0x9   :  { %797 = shalt.err (!%p794_p2)
}
   0xa   :  { %s798_s26 = scalar_lea.vmem %s29_s16, 64  ;;  %p803_p4 = scmp.lt.s32.totalorder %s29_s16, %s29_s16 }
   0xb   :  { %p799_p3 = scmp.ne.s32.totalorder %s29_s16, %s798_s26  ;;  %p804_p5 = scmp.lt.s32.totalorder %s798_s26, %s798_s26 }
   0xd   :  { %p805_p6 = por %p804_p5, %p803_p4 }
   0xf   :  { %p806_p7 = pnand %p805_p6, %p799_p3 }
  0x11   :  { %809 = shalt.err (!%p806_p7)
}
  0x12   :  { %31 = dma.hbm_to_vmem [thread:$0]  %s1022_s1, 64, %s29_s16, [#allocation6]  }
  0x13   :  { %s810_s5 = scalar_lea.hbm %s1021_s0, 128 }
  0x14   :  { %p811_p8 = scmp.ne.s32.totalorder %s1021_s0, %s810_s5  ;;  %p814_p9 = scmp.lt.u32.totalorder %s810_s5, %s1021_s0 }
  0x16   :  { %p816_p10 = pnand %p814_p9, %p811_p8 }
  0x18   :  { %819 = shalt.err (!%p816_p10)
}
  0x19   :  { %s820_s10 = scalar_lea.vmem %s19_s18, 128  ;;  %p825_p12 = scmp.lt.s32.totalorder %s19_s18, %s19_s18 }
  0x1a   :  { %p821_p11 = scmp.ne.s32.totalorder %s19_s18, %s820_s10  ;;  %p826_p13 = scmp.lt.s32.totalorder %s820_s10, %s820_s10 }
  0x1c   :  { %p827_p0 = por %p826_p13, %p825_p12 }
  0x1e   :  { %p828_p1 = pnand %p827_p0, %p821_p11 }
  0x20   :  { %831 = shalt.err (!%p828_p1)
}
  0x21   :  { %21 = dma.hbm_to_vmem [thread:$0]  %s1021_s0, 128, %s19_s18, [#allocation3]  }
  0x22   :  { %s884_s12 = smov [#allocation7]   ;;  %s832_s16 = scalar_lea.hbm %s1023_s2, 4096 }
  0x23   :  { %s37_s13 = sshll.u32 %s884_s12, 4  ;;  %p833_p2 = scmp.ne.s32.totalorder %s1023_s2, %s832_s16  ;;  %s38_s13 = int_to_ptr.vmem [resolvable:$true] %s37_s13 }
  0x24   :  { %p836_p3 = scmp.lt.u32.totalorder %s832_s16, %s1023_s2 }
  0x26   :  { %p838_p4 = pnand %p836_p3, %p833_p2 }
  0x28   :  { %841 = shalt.err (!%p838_p4)
}
  0x29   :  { %s842_s22 = scalar_lea.vmem %s38_s13, 4096  ;;  %p847_p6 = scmp.lt.s32.totalorder %s38_s13, %s38_s13 }
  0x2a   :  { %p843_p5 = scmp.ne.s32.totalorder %s38_s13, %s842_s22  ;;  %p848_p7 = scmp.lt.s32.totalorder %s842_s22, %s842_s22 }
  0x2c   :  { %p849_p8 = por %p848_p7, %p847_p6 }
  0x2e   :  { %p850_p9 = pnand %p849_p8, %p843_p5 }
  0x30   :  { %853 = shalt.err (!%p850_p9)
}
  0x31   :  { %s885_s0 = smov 64   ;;  %s886_s18 = smov 4  }
  0x32   :  { %43 = dma.hbm_to_vmem [thread:$0]  %s1023_s2, 4096, %s38_s13, [#allocation6], %s885_s0, %s885_s0, %s886_s18  }
  0x33   :  { %876 = dma.done.wait [#allocation3], 128  }
  0x34   :  { %877 = vsyncadd [#allocation3], 4294967168 }
  0x35   :  { %878 = dma.done.wait [#allocation6], 4160  }
  0x36   :  { %879 = vsyncadd [#allocation6], 4294963136  ;;  %v887_v0 = vmov 0.0   ;;  %vm888_vm0 = vmmov 0   ;;  %vm70_vm1 = vcmask 1043456   ;;  %v56_v2 = vld [vmem:[#allocation2] sm:$0xff] }
  0x37   :  { %662 = vmatprep.subr.bf16.mxu0 %v887_v0  ;;  %664 = vmatprep.mubr.msk.bf16.mxu0 %vm888_vm0, %v887_v0  ;;  %v58_v1 = vld [vmem:[#allocation5] sm:$0xf]  ;;  %v57_v4 = vpack.c.bf16 %v56_v2, %v56_v2  ;;  %v756_v5 = vld [vmem:[#allocation7] sm:$0xff]   ;;  %vm66_vm2 = vcmask 64512   ;;  %v757_v6 = vld [vmem:[#allocation7 + $0x8] sm:$0xff]   ;;  %s889_s8 = smov [#allocation8]  }
  0x38   :  { %668 = vmatprep.subr.bf16.mxu1 %v887_v0  ;;  %684 = vmatprep.mubr.msk.bf16.mxu1 %vm888_vm0, %v887_v0  ;;  %v72_v3 = vsel %vm70_vm1, %v58_v1, 0  ;;  %v758_v7 = vld [vmem:[#allocation7 + $0x10] sm:$0xff]   ;;  %v759_v8 = vld [vmem:[#allocation7 + $0x18] sm:$0xff]   ;;  %v760_v9 = vld [vmem:[#allocation7 + $0x20] sm:$0xff]   ;;  %s576_s9 = sshll.u32 %s889_s8, 4  ;;  %s577_s9 = int_to_ptr.vmem [resolvable:$true] %s576_s9 }
  0x39   :  { %663 = vmatpush3.bf16.msra.mxu0 %v72_v3  ;;  %669 = vmatpush3.bf16.msra.mxu1 %v756_v5  ;;  %v761_v10 = vld [vmem:[#allocation7 + $0x28] sm:$0xff]   ;;  %v762_v11 = vld [vmem:[#allocation7 + $0x30] sm:$0xff]   ;;  %v763_v12 = vld [vmem:[#allocation7 + $0x38] sm:$0xff]   ;;  %s854_s10 = scalar_lea.vmem %s577_s9, 128  ;;  %p859_p11 = scmp.lt.s32.totalorder %s577_s9, %s577_s9 }
  0x3a   :  { %688 = vmatprep.subr.bf16.mxu0 %v887_v0  ;;  %670 = vmatprep.subr.bf16.mxu1 %v887_v0  ;;  %v764_v13 = vld [vmem:[#allocation7 + $0x40] sm:$0xff]   ;;  %v765_v14 = vld [vmem:[#allocation7 + $0x48] sm:$0xff]   ;;  %v766_v15 = vld [vmem:[#allocation7 + $0x50] sm:$0xff]   ;;  %p855_p10 = scmp.ne.s32.totalorder %s577_s9, %s854_s10  ;;  %p860_p12 = scmp.lt.s32.totalorder %s854_s10, %s854_s10 }
  0x3b   :  { %v767_v16 = vld [vmem:[#allocation7 + $0x58] sm:$0xff]   ;;  %v768_v17 = vld [vmem:[#allocation7 + $0x60] sm:$0xff]   ;;  %v769_v18 = vld [vmem:[#allocation7 + $0x68] sm:$0xff]  }
  0x3c   :  { %665 = vmatmul.mubr.msk.bf16.vlgmr.msra.gmra.mrb[0].mxu0 %vm66_vm2, %v57_v4  ;;  %v586_v19 = vld [vmem:[%s1024_s3] ss:$0 sm:$0xff]  ;;  %v771_v28 = vld [vmem:[#allocation7 + $0x78] sm:$0xff]   ;;  %v772_v29 = vld [vmem:[#allocation7 + $0x80] sm:$0xff]   ;;  %p861_p13 = por %p860_p12, %p859_p11 }
  0x3d   :  { %704 = vmatprep.mubr.msk.bf16.mxu0 %vm888_vm0, %v887_v0  ;;  %671 = vmatpush3.bf16.msra.mxu1 %v757_v6  ;;  %v770_v27 = vld [vmem:[#allocation7 + $0x70] sm:$0xff]   ;;  %v773_v30 = vld [vmem:[#allocation7 + $0x88] sm:$0xff]   ;;  %v775_v32 = vld [vmem:[#allocation7 + $0x98] sm:$0xff]  }
  0x3e   :  { %672 = vmatprep.subr.bf16.mxu1 %v887_v0  ;;  %689 = vmatpush3.bf16.msra.mxu0 %v764_v13  ;;  %v774_v31 = vld [vmem:[#allocation7 + $0x90] sm:$0xff]   ;;  %v776_v33 = vld [vmem:[#allocation7 + $0xa0] sm:$0xff]   ;;  %v777_v34 = vld [vmem:[#allocation7 + $0xa8] sm:$0xff]   ;;  %p862_p0 = pnand %p861_p13, %p855_p10 }
  0x3f   :  { %690 = vmatprep.subr.bf16.mxu0 %v887_v0  ;;  %v588_v35 = vld [vmem:[%s1024_s3 + $0x1] ss:$0 sm:$0xff]  ;;  %v779_v44 = vld [vmem:[#allocation7 + $0xb8] sm:$0xff]   ;;  %v780_v45 = vld [vmem:[#allocation7 + $0xc0] sm:$0xff]  }
  0x40   :  { %v778_v43 = vld [vmem:[#allocation7 + $0xb0] sm:$0xff]   ;;  %v781_v46 = vld [vmem:[#allocation7 + $0xc8] sm:$0xff]   ;;  %v783_v48 = vld [vmem:[#allocation7 + $0xd8] sm:$0xff]  }
  0x41   :  { %673 = vmatpush3.bf16.msra.mxu1 %v758_v7  ;;  %v782_v47 = vld [vmem:[#allocation7 + $0xd0] sm:$0xff]   ;;  %v784_v49 = vld [vmem:[#allocation7 + $0xe0] sm:$0xff]   ;;  %v785_v50 = vld [vmem:[#allocation7 + $0xe8] sm:$0xff]  }
  0x42   :  { %674 = vmatprep.subr.bf16.mxu1 %v887_v0  ;;  %691 = vmatpush3.bf16.msra.mxu0 %v765_v14  ;;  %v597_v51 = vld [vmem:[%s1024_s3 + $0x2] ss:$0 sm:$0xff]  ;;  %v787_v60 = vld [vmem:[#allocation7 + $0xf8] sm:$0xff]   ;;  %v606_v61 = vld [vmem:[%s1024_s3 + $0x3] ss:$0 sm:$0xff] }
  0x43   :  { %692 = vmatprep.subr.bf16.mxu0 %v887_v0  ;;  %v786_v59 = vld [vmem:[#allocation7 + $0xf0] sm:$0xff]   ;;  %v615_v6 = vld [vmem:[%s1024_s3 + $0x4] ss:$0 sm:$0xff] }
  0x45   :  { %675 = vmatpush3.bf16.msra.mxu1 %v759_v8 }
  0x46   :  { %676 = vmatprep.subr.bf16.mxu1 %v887_v0  ;;  %693 = vmatpush3.bf16.msra.mxu0 %v766_v15 }
  0x47   :  { %694 = vmatprep.subr.bf16.mxu0 %v887_v0 }
  0x49   :  { %677 = vmatpush3.bf16.msra.mxu1 %v760_v9 }
  0x4a   :  { %678 = vmatprep.subr.bf16.mxu1 %v887_v0  ;;  %695 = vmatpush3.bf16.msra.mxu0 %v767_v16 }
  0x4b   :  { %696 = vmatprep.subr.bf16.mxu0 %v887_v0 }
  0x4d   :  { %679 = vmatpush3.bf16.msra.mxu1 %v761_v10 }
  0x4e   :  { %680 = vmatprep.subr.bf16.mxu1 %v887_v0  ;;  %697 = vmatpush3.bf16.msra.mxu0 %v768_v17 }
  0x4f   :  { %698 = vmatprep.subr.bf16.mxu0 %v887_v0 }
  0x51   :  { %681 = vmatpush3.bf16.msra.mxu1 %v762_v11 }
  0x52   :  { %682 = vmatprep.subr.bf16.mxu1 %v887_v0  ;;  %699 = vmatpush3.bf16.msra.mxu0 %v769_v18 }
  0x53   :  { %700 = vmatprep.subr.bf16.mxu0 %v887_v0 }
  0x55   :  { %683 = vmatpush3.bf16.msra.mxu1 %v763_v12 }
  0x56   :  { %708 = vmatprep.subr.bf16.mxu1 %v887_v0  ;;  %701 = vmatpush3.bf16.msra.mxu0 %v770_v27 }
  0x57   :  { %702 = vmatprep.subr.bf16.mxu0 %v887_v0 }
  0x5a   :  { %703 = vmatpush3.bf16.msra.mxu0 %v771_v28 }
  0x5b   :  { %728 = vmatprep.subr.bf16.mxu0 %v887_v0 }
 0x10f   :  { %v108_v20 = vpop.f32.mrb[0].mxu0 }
 0x110   :  { %v109_v21 = vadd.f32 %v586_v19, %v108_v20  ;;  %v666_v22 = vpop.f32.mrb[1].mxu0 }
 0x111   :  { %v111_v23 = vpop.f32.mrb[2].mxu0 }
 0x112   :  { %v114_v24 = vmax.f32 %v109_v21, 0.0  ;;  %v667_v25 = vpop.f32.mrb[3].mxu0 }
 0x114   :  { %v115_v26 = vpack.c.bf16 %v114_v24, %v114_v24 }
 0x116   :  { %685 = vmatmul.mubr.bf16.vlgmr.msra.gmra.mrb[0].mxu1 %v115_v26 }
 0x117   :  { %724 = vmatprep.mubr.msk.bf16.mxu1 %vm888_vm0, %v887_v0  ;;  %709 = vmatpush3.bf16.msra.mxu1 %v772_v29 }
 0x118   :  { %710 = vmatprep.subr.bf16.mxu1 %v887_v0 }
 0x11b   :  { %711 = vmatpush3.bf16.msra.mxu1 %v773_v30 }
 0x11c   :  { %712 = vmatprep.subr.bf16.mxu1 %v887_v0 }
 0x11f   :  { %713 = vmatpush3.bf16.msra.mxu1 %v774_v31 }
 0x120   :  { %714 = vmatprep.subr.bf16.mxu1 %v887_v0 }
 0x123   :  { %715 = vmatpush3.bf16.msra.mxu1 %v775_v32 }
 0x124   :  { %716 = vmatprep.subr.bf16.mxu1 %v887_v0 }
 0x127   :  { %717 = vmatpush3.bf16.msra.mxu1 %v776_v33 }
 0x128   :  { %718 = vmatprep.subr.bf16.mxu1 %v887_v0 }
 0x12b   :  { %719 = vmatpush3.bf16.msra.mxu1 %v777_v34 }
 0x12c   :  { %720 = vmatprep.subr.bf16.mxu1 %v887_v0 }
 0x12f   :  { %721 = vmatpush3.bf16.msra.mxu1 %v778_v43 }
 0x130   :  { %722 = vmatprep.subr.bf16.mxu1 %v887_v0 }
 0x133   :  { %723 = vmatpush3.bf16.msra.mxu1 %v779_v44 }
 0x1e9   :  { %v221_v36 = vpop.f32.mrb[0].mxu1 }
 0x1ea   :  { %v222_v37 = vadd.f32 %v588_v35, %v221_v36  ;;  %v686_v38 = vpop.f32.mrb[1].mxu1 }
 0x1eb   :  { %v224_v39 = vpop.f32.mrb[2].mxu1 }
 0x1ec   :  { %v227_v40 = vmax.f32 %v222_v37, 0.0  ;;  %v687_v41 = vpop.f32.mrb[3].mxu1 }
 0x1ee   :  { %v228_v42 = vpack.c.bf16 %v227_v40, %v227_v40 }
 0x1f0   :  { %705 = vmatmul.mubr.bf16.vlgmr.msra.gmra.mrb[4].mxu0 %v228_v42 }
 0x1f1   :  { %744 = vmatprep.mubr.msk.bf16.mxu0 %vm888_vm0, %v887_v0  ;;  %729 = vmatpush3.bf16.msra.mxu0 %v780_v45 }
 0x1f2   :  { %730 = vmatprep.subr.bf16.mxu0 %v887_v0 }
 0x1f5   :  { %731 = vmatpush3.bf16.msra.mxu0 %v781_v46 }
 0x1f6   :  { %732 = vmatprep.subr.bf16.mxu0 %v887_v0 }
 0x1f9   :  { %733 = vmatpush3.bf16.msra.mxu0 %v782_v47 }
 0x1fa   :  { %734 = vmatprep.subr.bf16.mxu0 %v887_v0 }
 0x1fd   :  { %735 = vmatpush3.bf16.msra.mxu0 %v783_v48 }
 0x1fe   :  { %736 = vmatprep.subr.bf16.mxu0 %v887_v0 }
 0x201   :  { %737 = vmatpush3.bf16.msra.mxu0 %v784_v49 }
 0x202   :  { %738 = vmatprep.subr.bf16.mxu0 %v887_v0 }
 0x205   :  { %739 = vmatpush3.bf16.msra.mxu0 %v785_v50 }
 0x206   :  { %740 = vmatprep.subr.bf16.mxu0 %v887_v0 }
 0x209   :  { %741 = vmatpush3.bf16.msra.mxu0 %v786_v59 }
 0x20a   :  { %742 = vmatprep.subr.bf16.mxu0 %v887_v0 }
 0x20d   :  { %743 = vmatpush3.bf16.msra.mxu0 %v787_v60 }
 0x2c3   :  { %v335_v52 = vpop.f32.mrb[4].mxu0 }
 0x2c4   :  { %v336_v53 = vadd.f32 %v597_v51, %v335_v52  ;;  %v706_v54 = vpop.f32.mrb[5].mxu0 }
 0x2c5   :  { %v338_v55 = vpop.f32.mrb[6].mxu0 }
 0x2c6   :  { %v341_v56 = vmax.f32 %v336_v53, 0.0  ;;  %v707_v57 = vpop.f32.mrb[7].mxu0 }
 0x2c8   :  { %v342_v58 = vpack.c.bf16 %v341_v56, %v341_v56 }
 0x2ca   :  { %725 = vmatmul.mubr.bf16.vlgmr.msra.gmra.mrb[4].mxu1 %v342_v58 }
 0x39d   :  { %v449_v62 = vpop.f32.mrb[4].mxu1 }
 0x39e   :  { %v450_v63 = vadd.f32 %v606_v61, %v449_v62  ;;  %v726_v1 = vpop.f32.mrb[5].mxu1 }
 0x39f   :  { %v452_v2 = vpop.f32.mrb[6].mxu1 }
 0x3a0   :  { %v455_v3 = vmax.f32 %v450_v63, 0.0  ;;  %v727_v4 = vpop.f32.mrb[7].mxu1 }
 0x3a2   :  { %v456_v5 = vpack.c.bf16 %v455_v3, %v455_v3 }
 0x3a4   :  { %745 = vmatmul.mubr.bf16.vlgmr.msra.gmra.mrb[8].mxu0 %v456_v5 }
 0x477   :  { %v563_v0 = vpop.f32.mrb[8].mxu0 }
 0x478   :  { %v564_v7 = vadd.f32 %v615_v6, %v563_v0  ;;  %v746_v8 = vpop.f32.mrb[9].mxu0 }
 0x479   :  { %v566_v9 = vpop.f32.mrb[10].mxu0 }
 0x47a   :  { %569 = vst [vmem:[#allocation8] sm:$0xff] %v564_v7  ;;  %v747_v10 = vpop.f32.mrb[11].mxu0 }
 0x47b   :  { %865 = shalt.err (!%p862_p0)
}
 0x47c   :  { %s866_s3 = scalar_lea.hbm %s1025_s4, 128 }
 0x47d   :  { %p867_p1 = scmp.ne.s32.totalorder %s1025_s4, %s866_s3  ;;  %p870_p2 = scmp.lt.u32.totalorder %s866_s3, %s1025_s4 }
 0x47f   :  { %p872_p3 = pnand %p870_p2, %p867_p1 }
 0x481   :  { %875 = shalt.err (!%p872_p3)
}
 0x482   :  { %579 = dma.vmem_to_hbm [thread:$0]  %s577_s9, 128, %s1025_s4, [#allocation4]  }
 0x483   :  { %880 = dma.done.wait [#allocation4], 128  }
 0x484   :  { %881 = vsyncadd [#allocation4], 4294967168 }
 0x485   :  { %583 = vsyncpa [#allocation3], 1 }
 0x486   :  { %584 = vsyncpa [#allocation6], 1 }
 0x487   :  { %585 = vsyncpa [#allocation4], 1 }

</bundles_post_ra>
